<compile_context>
chip_gen: v6e
topology: v6e:2x2x1
jax: 0.10.0
libtpu: 0.0.40
codegen_flags: <defaults>
</compile_context>

<pallas_src>
import functools

import jax
import jax.numpy as jnp
from jax import lax
from jax.experimental import pallas as pl
from jax.experimental.pallas import tpu as pltpu

LANES = 128
SUBLANES = 8
GRANULE = SUBLANES * LANES   # one f32 vreg worth of elements
TM_MAX = 2048                # rows per tile (1 MiB / input block in f32)


def _counter_loss_kernel(p_ref, t_ref, o_ref, *, tm, per_core, rows_total,
                         needs_mask):
    c = pl.program_id(0)     # TensorCore shard (parallel)
    i = pl.program_id(1)     # row-tile within the shard (arbitrary/sequential)

    @pl.when(i == 0)
    def _():
        o_ref[...] = jnp.zeros_like(o_ref)

    diff = jnp.abs(p_ref[...].astype(jnp.float32)
                   - t_ref[...].astype(jnp.float32))

    if needs_mask:
        # Mask rows that fall beyond the real array (partial last tile and/or
        # clamped extra tiles of the 2-core split). Uses the *intended* global
        # row derived from program ids, so clamped duplicate data is zeroed.
        tile = c * per_core + i
        row = tile * tm + lax.broadcasted_iota(jnp.int32, (tm, LANES), 0)
        diff = jnp.where(row < rows_total, diff, 0.0)

    # Vreg-shaped partial sum: pure VPU adds in the hot loop, no cross-lane
    # reduce until the (tiny) wrapper epilogue.
    partial = diff.reshape(tm // SUBLANES, SUBLANES, LANES).sum(axis=0)
    o_ref[...] += partial[None, :, :]


def counter_loss(predict, target):
    assert predict.shape == target.shape
    n = predict.size

    # Flatten in native dtype; the f32 cast happens inside the kernel so
    # sub-32-bit inputs stream from HBM at native width.
    p_flat = predict.reshape(-1)
    t_flat = target.reshape(-1)

    # Pad only when the element count is not a multiple of one (8,128) vreg.
    # (No-op for typical NCHW sizes; padding is identical zeros in both
    # tensors so it contributes |0-0| = 0, and we divide by the true n.)
    pad = (-n) % GRANULE
    if pad:
        p_flat = jnp.pad(p_flat, (0, pad))
        t_flat = jnp.pad(t_flat, (0, pad))

    M = (n + pad) // LANES          # number of 128-lane rows, multiple of 8
    p2 = p_flat.reshape(M, LANES)
    t2 = t_flat.reshape(M, LANES)

    tm = min(TM_MAX, M)             # multiple of 8 (M is, and TM_MAX is)
    num_tiles = pl.cdiv(M, tm)
    n_cores = 2 if num_tiles >= 2 else 1   # shard tiles across TCs (v7x)
    per_core = pl.cdiv(num_tiles, n_cores)
    needs_mask = (n_cores * per_core * tm) != M

    def in_index(c, i):
        # Clamp so we never request a fully out-of-bounds block; clamped
        # duplicates are zeroed by the in-kernel mask.
        tile = jnp.minimum(c * per_core + i, num_tiles - 1)
        return (tile, 0)

    kernel = functools.partial(
        _counter_loss_kernel,
        tm=tm, per_core=per_core, rows_total=M, needs_mask=needs_mask)

    partials = pl.pallas_call(
        kernel,
        out_shape=jax.ShapeDtypeStruct((n_cores, SUBLANES, LANES), jnp.float32),
        grid_spec=pltpu.PrefetchScalarGridSpec(
            num_scalar_prefetch=0,
            grid=(n_cores, per_core),
            in_specs=[
                pl.BlockSpec((tm, LANES), in_index),
                pl.BlockSpec((tm, LANES), in_index),
            ],
            out_specs=pl.BlockSpec((1, SUBLANES, LANES),
                                   lambda c, i: (c, 0, 0)),
        ),
        compiler_params=pltpu.CompilerParams(
            dimension_semantics=("parallel", "arbitrary")),
    )(p2, t2)

    # Tiny epilogue: one reduce over (n_cores, 8, 128) partials + scalar math.
    total = jnp.sum(partials)
    mean = total / jnp.float32(n)
    return 1.0 - 1.0 / (1.0 + mean)


def _reference(predict, target):
    means = jnp.mean(jnp.abs(predict.astype(jnp.float32)
                             - target.astype(jnp.float32)))
    return 1.0 - 1.0 / (1.0 + means)


if __name__ == "__main__":
    key = jax.random.PRNGKey(0)

    # Small NCHW-like prediction/target pair (single-tile path).
    k1, k2 = jax.random.split(key)
    shape = (2, 4, 16, 16)
    predict = jax.random.normal(k1, shape, dtype=jnp.float32)
    target = jax.random.normal(k2, shape, dtype=jnp.float32)

    loss = counter_loss(predict, target)
    jax.block_until_ready(loss)
    assert jnp.allclose(loss, _reference(predict, target),
                        atol=1e-5, rtol=1e-5), (loss, _reference(predict, target))

    # Second check exercising the multi-tile / two-core / masked-tail path.
    k3, k4 = jax.random.split(k2)
    shape2 = (4, 8, 96, 128)   # 393216 elems -> 3072 rows -> 2 tiles, partial last
    predict2 = jax.random.normal(k3, shape2, dtype=jnp.float32)
    target2 = jax.random.normal(k4, shape2, dtype=jnp.float32)

    loss2 = counter_loss(predict2, target2)
    jax.block_until_ready(loss2)
    assert jnp.allclose(loss2, _reference(predict2, target2),
                        atol=1e-5, rtol=1e-5), (loss2, _reference(predict2, target2))

    print("KERNEL_OK")
</pallas_src>

<mosaic_0001>
module attributes {stable_mosaic.version = 11 : i64} {
  func.func @_counter_loss_kernel(%arg0: i32, %arg1: i32, %arg2: memref<16x128xf32, #tpu.memory_space<vmem>>, %arg3: memref<16x128xf32, #tpu.memory_space<vmem>>, %arg4: memref<1x8x128xf32, #tpu.memory_space<vmem>>) attributes {dimension_semantics = [#tpu.dimension_semantics<parallel>, #tpu.dimension_semantics<arbitrary>], iteration_bounds = array<i64: 1, 1>, scalar_prefetch = 0 : i64, scratch_operands = 0 : i64, tpu.core_type = #tpu.core_type<tc>, window_params = [{transform_indices = @transform_0, window_bounds = array<i64: 16, 128>}, {transform_indices = @transform_1, window_bounds = array<i64: 16, 128>}, {transform_indices = @transform_2, window_bounds = array<i64: 1, 8, 128>}]} {
    %c0_i32 = arith.constant 0 : i32
    %0 = arith.cmpi eq, %arg1, %c0_i32 : i32
    %1 = arith.extui %0 : i1 to i32
    %c0_i32_0 = arith.constant 0 : i32
    %2 = arith.cmpi ne, %1, %c0_i32_0 : i32
    scf.if %2 {
      %cst_10 = arith.constant 0.000000e+00 : f32
      %13 = vector.broadcast %cst_10 : f32 to vector<1x8x128xf32>
      %c0_11 = arith.constant 0 : index
      %c0_12 = arith.constant 0 : index
      %c0_13 = arith.constant 0 : index
      %14 = vector.load %arg4[%c0_11, %c0_12, %c0_13] : memref<1x8x128xf32, #tpu.memory_space<vmem>>, vector<1x8x128xf32>
      tpu.vector_store %arg4[%c0_11, %c0_12, %c0_13], %13 {strides = array<i32>} : memref<1x8x128xf32, #tpu.memory_space<vmem>>, vector<1x8x128xf32>,
    } else {
    }
    %c0 = arith.constant 0 : index
    %c0_1 = arith.constant 0 : index
    %3 = vector.load %arg2[%c0, %c0_1] : memref<16x128xf32, #tpu.memory_space<vmem>>, vector<16x128xf32>
    %c0_2 = arith.constant 0 : index
    %c0_3 = arith.constant 0 : index
    %4 = vector.load %arg3[%c0_2, %c0_3] : memref<16x128xf32, #tpu.memory_space<vmem>>, vector<16x128xf32>
    %5 = arith.subf %3, %4 : vector<16x128xf32>
    %6 = math.absf %5 : vector<16x128xf32>
    %7 = vector.shape_cast %6 : vector<16x128xf32> to vector<2x8x128xf32>
    %cst = arith.constant dense<0.000000e+00> : vector<8x128xf32>
    %8 = vector.multi_reduction <add>, %7, %cst [0] : vector<2x8x128xf32> to vector<8x128xf32>
    %c0_4 = arith.constant 0 : index
    %c0_5 = arith.constant 0 : index
    %c0_6 = arith.constant 0 : index
    %9 = vector.load %arg4[%c0_4, %c0_5, %c0_6] : memref<1x8x128xf32, #tpu.memory_space<vmem>>, vector<1x8x128xf32>
    %10 = vector.shape_cast %8 : vector<8x128xf32> to vector<1x8x128xf32>
    %11 = arith.addf %9, %10 : vector<1x8x128xf32>
    %c0_7 = arith.constant 0 : index
    %c0_8 = arith.constant 0 : index
    %c0_9 = arith.constant 0 : index
    %12 = vector.load %arg4[%c0_7, %c0_8, %c0_9] : memref<1x8x128xf32, #tpu.memory_space<vmem>>, vector<1x8x128xf32>
    tpu.vector_store %arg4[%c0_7, %c0_8, %c0_9], %11 {strides = array<i32>} : memref<1x8x128xf32, #tpu.memory_space<vmem>>, vector<1x8x128xf32>,
    return
  }
  func.func @transform_0(%arg0: i32, %arg1: i32) -> (i32, i32) {
    %c1_i32 = arith.constant 1 : i32
    %0 = arith.muli %arg0, %c1_i32 : i32
    %1 = arith.addi %0, %arg1 : i32
    %c0_i32 = arith.constant 0 : i32
    %2 = arith.minsi %1, %c0_i32 : i32
    %c0_i32_0 = arith.constant 0 : i32
    %c0_i32_1 = arith.constant 0 : i32
    return %2, %c0_i32_0 : i32, i32
  }
  func.func @transform_1(%arg0: i32, %arg1: i32) -> (i32, i32) {
    %c1_i32 = arith.constant 1 : i32
    %0 = arith.muli %arg0, %c1_i32 : i32
    %1 = arith.addi %0, %arg1 : i32
    %c0_i32 = arith.constant 0 : i32
    %2 = arith.minsi %1, %c0_i32 : i32
    %c0_i32_0 = arith.constant 0 : i32
    %c0_i32_1 = arith.constant 0 : i32
    return %2, %c0_i32_0 : i32, i32
  }
  func.func @transform_2(%arg0: i32, %arg1: i32) -> (i32, i32, i32) {
    %c0_i32 = arith.constant 0 : i32
    %c0_i32_0 = arith.constant 0 : i32
    %c0_i32_1 = arith.constant 0 : i32
    return %arg0, %c0_i32, %c0_i32_0 : i32, i32, i32
  }
}

</mosaic_0001>

<bundles_post_ra>
// kernel: tpu_custom_call.1
= control target key start
LH: loop header
LB: loop body
LE: loop exit
PB: predicated region body
PF: predicated region fallthrough
CT: control target
= control target key end

     0   :  { %7 = vsyncpa [#allocation3], 0  ;;  %s198_s0 = inlined_call_operand.hbm [shape: f32[16,128], index: 0, kind: input, shape index: {}]   ;;  %s199_s1 = inlined_call_operand.hbm [shape: f32[16,128], index: 1, kind: input, shape index: {}]   ;;  %s200_s2 = inlined_call_operand.hbm [shape: f32[1,8,128], index: 2, kind: output, shape index: {}]  }
   0x1   :  { %8 = vsyncpa [#allocation6], 0 }
   0x2   :  { %9 = vsyncpa [#allocation4], 0  ;;  %s169_s9 = smov [#allocation2]  }
   0x3   :  { %s21_s10 = sshll.u32 %s169_s9, 4  ;;  %s22_s10 = int_to_ptr.vmem [resolvable:$true] %s21_s10 }
   0x4   :  { %s111_s11 = scalar_lea.vmem %s22_s10, 256  ;;  %p116_p1 = scmp.lt.s32.totalorder %s22_s10, %s22_s10 }
   0x5   :  { %p112_p0 = scmp.ne.s32.totalorder %s22_s10, %s111_s11  ;;  %p117_p2 = scmp.lt.s32.totalorder %s111_s11, %s111_s11 }
   0x7   :  { %p118_p3 = por %p117_p2, %p116_p1 }
   0x9   :  { %p119_p4 = pnand %p118_p3, %p112_p0 }
   0xb   :  { %122 = shalt.err (!%p119_p4)
}
   0xc   :  { %s170_s12 = smov 128   ;;  %s171_s13 = smov 8  }
   0xd   :  { %27 = dma.hbm_to_vmem [thread:$0]  %s198_s0, 256, %s22_s10, [#allocation3], %s170_s12, %s170_s12, %s171_s13  }
   0xe   :  { %s172_s16 = smov [#allocation5]  }
   0xf   :  { %s39_s17 = sshll.u32 %s172_s16, 4  ;;  %s40_s17 = int_to_ptr.vmem [resolvable:$true] %s39_s17 }
  0x10   :  { %s131_s18 = scalar_lea.vmem %s40_s17, 256  ;;  %p136_p6 = scmp.lt.s32.totalorder %s40_s17, %s40_s17 }
  0x11   :  { %p132_p5 = scmp.ne.s32.totalorder %s40_s17, %s131_s18  ;;  %p137_p7 = scmp.lt.s32.totalorder %s131_s18, %s131_s18 }
  0x13   :  { %p138_p8 = por %p137_p7, %p136_p6 }
  0x15   :  { %p139_p9 = pnand %p138_p8, %p132_p5 }
  0x17   :  { %142 = shalt.err (!%p139_p9)
}
  0x18   :  { %45 = dma.hbm_to_vmem [thread:$0]  %s199_s1, 256, %s40_s17, [#allocation6], %s170_s12, %s170_s12, %s171_s13  }
  0x19   :  { %163 = dma.done.wait [#allocation3], 256  }
  0x1a   :  { %164 = vsyncadd [#allocation3], 4294967040 }
  0x1b   :  { %165 = dma.done.wait [#allocation6], 256  }
  0x1c   :  { %166 = vsyncadd [#allocation6], 4294967040  ;;  %v65_v0 = vld [vmem:[#allocation2] sm:$0xff]  ;;  %v66_v1 = vld [vmem:[#allocation2 + $0x8] sm:$0xff]  ;;  %s173_s0 = smov [#allocation7]  }
  0x1d   :  { %v67_v2 = vld [vmem:[#allocation5] sm:$0xff]  ;;  %v68_v3 = vld [vmem:[#allocation5 + $0x8] sm:$0xff]  ;;  %s83_s21 = sshll.u32 %s173_s0, 4  ;;  %s84_s21 = int_to_ptr.vmem [resolvable:$true] %s83_s21 }
  0x1e   :  { %v69_v4 = vsub.f32 %v65_v0, %v67_v2  ;;  %v70_v5 = vsub.f32 %v66_v1, %v68_v3  ;;  %s143_s22 = scalar_lea.vmem %s84_s21, 128  ;;  %p148_p11 = scmp.lt.s32.totalorder %s84_s21, %s84_s21 }
  0x1f   :  { %p144_p10 = scmp.ne.s32.totalorder %s84_s21, %s143_s22  ;;  %p149_p12 = scmp.lt.s32.totalorder %s143_s22, %s143_s22 }
  0x20   :  { %v71_v6 = vand.u32 2147483647, %v69_v4  ;;  %v72_v7 = vand.u32 2147483647, %v70_v5 }
  0x21   :  { %p150_p13 = por %p149_p12, %p148_p11 }
  0x22   :  { %v73_v8 = vadd.f32 %v72_v7, %v71_v6 }
  0x23   :  { %p151_p0 = pnand %p150_p13, %p144_p10 }
  0x24   :  { %76 = vst [vmem:[#allocation7] sm:$0xff] %v73_v8 }
  0x25   :  { %154 = shalt.err (!%p151_p0)
}
  0x26   :  { %86 = dma.vmem_to_hbm [thread:$0]  %s84_s21, 128, %s200_s2, [#allocation4]  }
  0x27   :  { %167 = dma.done.wait [#allocation4], 128  }
  0x28   :  { %168 = vsyncadd [#allocation4], 4294967168 }
  0x29   :  { %90 = vsyncpa [#allocation3], 1 }
  0x2a   :  { %91 = vsyncpa [#allocation6], 1 }
  0x2b   :  { %92 = vsyncpa [#allocation4], 1 }

</bundles_post_ra>
